<compile_context>
chip_gen: v5e
topology: v5e:2x2
jax: 0.10.0
libtpu: 0.0.40
codegen_flags: <defaults>
</compile_context>

<pallas_src>
import jax
import jax.numpy as jnp
from jax.experimental import pallas as pl
from jax.experimental.pallas import tpu as pltpu

_LANES = 512      # lane width (multiple of 128 -> unmasked full-width stores)
_SUBLANES = 8


def _pick_max_tile_rows():
    """Per-chip tile cap: 2 MiB f32 buffers on v5e, 4 MiB on v6e/v7x."""
    try:
        kind = jax.devices()[0].device_kind.lower()
    except Exception:  # pragma: no cover - defensive
        kind = ""
    if ("v5 lite" in kind) or ("v5e" in kind) or ("v5lite" in kind):
        # 1024 x 512 f32 = 2 MiB/buffer -> 8 MiB double-buffered in+out,
        # inside v5e's 16 MiB default scoped-VMEM limit.
        return 1024
    # 2048 x 512 f32 = 4 MiB/buffer -> 16 MiB double-buffered in+out,
    # inside v6e/v7x's 32 MiB default scoped-VMEM limit.
    return 2048


_MAX_TILE_ROWS = _pick_max_tile_rows()


def _affine_kernel(ab_ref, x_ref, o_ref):
    # ab_ref lives in SMEM via scalar prefetch: ab_ref[0] = a, ab_ref[1] = b.
    a = ab_ref[0]
    b = ab_ref[1]
    o_ref[...] = (x_ref[...].astype(jnp.float32) * a + b).astype(o_ref.dtype)


@jax.jit
def affine_forward(x, a, b):
    """x: any-shape tensor (e.g. NCHW image); a, b: shape-(1,) params."""
    orig_shape = x.shape
    orig_dtype = x.dtype
    total = x.size

    a_s = a.reshape(()).astype(orig_dtype)
    b_s = b.reshape(()).astype(orig_dtype)

    # Degenerate / non-lane-aligned sizes: a standalone kernel would need an
    # HBM pad + output-slice round trip (~3x traffic); the fused XLA
    # elementwise is strictly cheaper, so use it directly.
    if total == 0 or total % _LANES != 0:
        return (a_s * x + b_s).astype(orig_dtype)

    rows = total // _LANES
    x2 = x.reshape(rows, _LANES)  # contiguous reshape: free (bitcast), no copy

    if rows <= _MAX_TILE_ROWS:
        # Single full-extent block (allowed even if rows % 8 != 0).
        tile_rows = rows
    else:
        # Sublane-aligned cap; the boundary block (rows % tile_rows != 0) is
        # read-padded / write-masked by Pallas for free.
        tile_rows = _MAX_TILE_ROWS

    n_tiles = pl.cdiv(rows, tile_rows)

    # Scalars packed into a tiny SMEM-resident array (kept f32 for SMEM loads).
    ab = jnp.concatenate([a.reshape(-1), b.reshape(-1)]).astype(jnp.float32)

    block = pl.BlockSpec((tile_rows, _LANES), lambda i, ab_ref: (i, 0))

    out2 = pl.pallas_call(
        _affine_kernel,
        out_shape=jax.ShapeDtypeStruct((rows, _LANES), orig_dtype),
        grid_spec=pltpu.PrefetchScalarGridSpec(
            num_scalar_prefetch=1,
            grid=(n_tiles,),
            in_specs=[block],
            out_specs=block,
        ),
        compiler_params=pltpu.CompilerParams(
            dimension_semantics=("parallel",)),
        cost_estimate=pl.CostEstimate(
            flops=2 * total,
            transcendentals=0,
            bytes_accessed=2 * total * x.dtype.itemsize),
    )(ab, x2)

    return out2.reshape(orig_shape)


if __name__ == "__main__":
    key = jax.random.PRNGKey(0)

    # AffineTransform.__init__ uses a=1, b=0; test with deterministic
    # non-trivial ("trained") values so both scale and shift paths matter.
    a = jnp.full((1,), 1.7, dtype=jnp.float32)
    b = jnp.full((1,), -0.3, dtype=jnp.float32)

    # Primary: small NCHW image batch (lane-aligned -> Pallas kernel path).
    x = jax.random.normal(key, (2, 4, 16, 16), dtype=jnp.float32)
    out = jax.block_until_ready(affine_forward(x, a, b))
    ref = a * x + b
    assert out.shape == x.shape and out.dtype == x.dtype
    assert jnp.max(jnp.abs(out - ref)) < 1e-6

    # Non-lane-aligned size -> fused plain-JAX fallback (no pad/slice copies).
    key2, _ = jax.random.split(key)
    x_tail = jax.random.normal(key2, (1, 3, 17, 17), dtype=jnp.float32)
    out_tail = jax.block_until_ready(affine_forward(x_tail, a, b))
    assert out_tail.shape == x_tail.shape
    assert jnp.max(jnp.abs(out_tail - (a * x_tail + b))) < 1e-6

    # TODO(synk): TransformLayer.step (dataloader loop, loss/backward, optimizer,
    # visualization) is host-side training orchestration with no Pallas equivalent.

    print("KERNEL_OK")
</pallas_src>

<mosaic_0001>
module attributes {stable_mosaic.version = 11 : i64} {
  func.func @_affine_kernel(%arg0: i32, %arg1: memref<2xf32, #tpu.memory_space<smem>>, %arg2: memref<4x512xf32, #tpu.memory_space<vmem>>, %arg3: memref<4x512xf32, #tpu.memory_space<vmem>>) attributes {dimension_semantics = [#tpu.dimension_semantics<parallel>], iteration_bounds = array<i64: 1>, scalar_prefetch = 1 : i64, scratch_operands = 0 : i64, tpu.core_type = #tpu.core_type<tc>, window_params = [{transform_indices = @transform_0, window_bounds = array<i64: 4, 512>}, {transform_indices = @transform_1, window_bounds = array<i64: 4, 512>}]} {
    %c0 = arith.constant 0 : index
    %0 = memref.load %arg1[%c0] : memref<2xf32, #tpu.memory_space<smem>>
    %c1 = arith.constant 1 : index
    %1 = memref.load %arg1[%c1] : memref<2xf32, #tpu.memory_space<smem>>
    %c0_0 = arith.constant 0 : index
    %c0_1 = arith.constant 0 : index
    %2 = vector.load %arg2[%c0_0, %c0_1] : memref<4x512xf32, #tpu.memory_space<vmem>>, vector<4x512xf32>
    %3 = vector.broadcast %0 : f32 to vector<4x512xf32>
    %4 = arith.mulf %2, %3 : vector<4x512xf32>
    %5 = vector.broadcast %1 : f32 to vector<4x512xf32>
    %6 = arith.addf %4, %5 : vector<4x512xf32>
    %c0_2 = arith.constant 0 : index
    %c0_3 = arith.constant 0 : index
    %7 = vector.load %arg3[%c0_2, %c0_3] : memref<4x512xf32, #tpu.memory_space<vmem>>, vector<4x512xf32>
    tpu.vector_store %arg3[%c0_2, %c0_3], %6 {strides = array<i32>} : memref<4x512xf32, #tpu.memory_space<vmem>>, vector<4x512xf32>,
    return
  }
  func.func @transform_0(%arg0: i32, %arg1: memref<2xf32, #tpu.memory_space<smem>>) -> (i32, i32) {
    %c0_i32 = arith.constant 0 : i32
    %c0_i32_0 = arith.constant 0 : i32
    return %arg0, %c0_i32 : i32, i32
  }
  func.func @transform_1(%arg0: i32, %arg1: memref<2xf32, #tpu.memory_space<smem>>) -> (i32, i32) {
    %c0_i32 = arith.constant 0 : i32
    %c0_i32_0 = arith.constant 0 : i32
    return %arg0, %c0_i32 : i32, i32
  }
}

</mosaic_0001>

<bundles_post_ra>
// kernel: affine_forward.1
= control target key start
LH: loop header
LB: loop body
LE: loop exit
PB: predicated region body
PF: predicated region fallthrough
CT: control target
= control target key end

     0   :  { %s49_s12 = smov [#allocation3]   ;;  %s80_s0 = inlined_call_operand.vmem [shape: f32[2], index: 0, kind: input, shape index: {}]   ;;  %s81_s1 = inlined_call_operand.vmem [shape: f32[4,512], index: 1, kind: input, shape index: {}]   ;;  %s82_s2 = inlined_call_operand.vmem [shape: f32[4,512], index: 2, kind: output, shape index: {}]  }
   0x1   :  { %s8_s11 = sshll.u32 %s80_s0, 4  ;;  %s9_s11 = int_to_ptr.vmem [resolvable:$true] %s8_s11 }
   0x2   :  { %11 = dma.vmem_to_smem %s9_s11, 16, %s49_s12, [#allocation2] }
   0x3   :  { %47 = dma.done.wait [#allocation2], 16 }
   0x4   :  { %48 = vsyncadd [#allocation2], 4294967280 }
   0x5   :  { %14 = sfence }
   0x6   :  { %s17_s13 = sld [smem:[#allocation3]]  ;;  %v19_v0 = vld [vmem:[%s81_s1] sm:$0xff]  ;;  %v20_v1 = vld [vmem:[%s81_s1 + $0x8] sm:$0xff] }
   0x7   :  { %s33_s14 = sld [smem:[#allocation3 + $0x1]] }
   0xc   :  { %v21_v2 = vstv %s17_s13 }
   0xd   :  { %v22_v3 = vmul.f32 %v21_v2, %v19_v0  ;;  %v24_v4 = vstv %s33_s14  ;;  %v23_v5 = vmul.f32 %v21_v2, %v20_v1 }
   0xf   :  { %v25_v6 = vadd.f32 %v24_v4, %v22_v3  ;;  %v26_v7 = vadd.f32 %v24_v4, %v23_v5 }
  0x11   :  { %27 = vst [vmem:[%s82_s2] sm:$0xff] %v25_v6 }
  0x12   :  { %28 = vst [vmem:[%s82_s2 + $0x8] sm:$0xff] %v26_v7 }

</bundles_post_ra>
